<compile_context>
chip_gen: v7x
topology: tpu7x:2x2x1
jax: 0.10.0
libtpu: 0.0.40
codegen_flags: <defaults>
</compile_context>

<pallas_src>
import functools
import math

import jax
import jax.numpy as jnp
from jax import lax
from jax.experimental import pallas as pl
from jax.experimental.pallas import tpu as pltpu

# ----------------------------- model config ---------------------------------
DIM = 32                 # channels C per token
HEADS = 8
HEAD_DIM = DIM // HEADS  # 4
B = 2                    # batch
LQ = 8                   # query length
LKV = 16                 # key/value length (different from LQ: true cross-attn)


# --------------------- host-side one-time constants --------------------------
def build_attn_constants(batch, lq, lkv, heads, head_dim, dtype=jnp.float32):
    """Block-diagonal head mask and additive cross-batch score mask.

    head_mask:  (B*H*Lq, C)     1.0 where channel c belongs to head(row), else 0.
    batch_mask: (B*H*Lq, B*Lkv) 0.0 where col's batch == row's batch, else -1e30.
    """
    C = heads * head_dim
    r = jnp.arange(batch * heads * lq)
    row_head = (r // lq) % heads
    row_batch = r // (heads * lq)
    col_c = jnp.arange(C)
    head_mask = (row_head[:, None] == (col_c[None, :] // head_dim)).astype(dtype)
    col_kv = jnp.arange(batch * lkv)
    batch_mask = jnp.where(row_batch[:, None] == (col_kv[None, :] // lkv),
                           jnp.array(0.0, dtype), jnp.array(-1e30, dtype))
    return head_mask, batch_mask


# ------------------------------ Pallas kernel -------------------------------
def _cross_attn_kernel(q_ref, kv_ref, wq_ref, wkv_ref, wout_ref, bout_ref,
                       hmask_ref, bmask_ref, o_ref, *, batch, lq, lkv, heads):
    # q_ref:     (B*Lq,  C)        queries, batch folded into rows
    # kv_ref:    (B*Lkv, C)        key/value tokens, batch folded into rows
    # wq_ref:    (C, C)            q_proj weight (transposed, pre-scaled by 1/sqrt(hd))
    # wkv_ref:   (C, 2C)           fused kv_proj weight (transposed), no bias
    # wout_ref:  (C, C)            out_proj weight (transposed)
    # bout_ref:  (1, C)            out_proj bias
    # hmask_ref: (B*H*Lq, C)       block-diagonal head mask
    # bmask_ref: (B*H*Lq, B*Lkv)   additive cross-batch mask (0 / -1e30)
    # o_ref:     (B*Lq,  C)        output
    C = wq_ref.shape[0]

    # ---- projections over ALL batch rows at once (2 MXU pushes) -------------
    qp = jnp.dot(q_ref[...], wq_ref[...],
                 preferred_element_type=jnp.float32)              # (B*Lq, C)
    kvp = jnp.dot(kv_ref[...], wkv_ref[...],
                  preferred_element_type=jnp.float32)             # (B*Lkv, 2C)
    kp = kvp[:, :C]                                               # (B*Lkv, C)
    vp = kvp[:, C:]                                               # (B*Lkv, C) lane extract

    # ---- block-diagonal, batch-folded Q: (B*H*Lq, C) -------------------------
    hmask = hmask_ref[...]
    q_bd = jnp.broadcast_to(qp.reshape(batch, 1, lq, C),
                            (batch, heads, lq, C)).reshape(batch * heads * lq, C)
    q_bd = q_bd * hmask

    # ---- ONE score matmul for all batches & heads ----------------------------
    # bf16 operands (MXU-native), f32 accumulation; f32 transpose of K (XLU).
    kpt = kp.T                                                    # (C, B*Lkv)
    s = jnp.dot(q_bd.astype(jnp.bfloat16), kpt.astype(jnp.bfloat16),
                preferred_element_type=jnp.float32)               # (B*H*Lq, B*Lkv)
    s = s + bmask_ref[...]          # -1e30 on cross-batch lanes BEFORE max/exp

    # ---- softmax (f32, lane reductions; approx reciprocal on EUP) ------------
    s = s - jnp.max(s, axis=-1, keepdims=True)
    p = jnp.exp(s)
    p = p * pl.reciprocal(jnp.sum(p, axis=-1, keepdims=True), approx=True)

    # ---- ONE pv matmul; cross-batch columns of p are exactly zero ------------
    pv = jnp.dot(p.astype(jnp.bfloat16), vp.astype(jnp.bfloat16),
                 preferred_element_type=jnp.float32)              # (B*H*Lq, C)
    pv = pv * hmask                 # keep each head's own channel block
    attn = pv.reshape(batch, heads, lq, C).sum(axis=1).reshape(batch * lq, C)

    # ---- output projection ----------------------------------------------------
    out = jnp.dot(attn, wout_ref[...],
                  preferred_element_type=jnp.float32) + bout_ref[...]
    o_ref[...] = out.astype(o_ref.dtype)


# ------------------------------ wrapper --------------------------------------
@jax.jit
def cross_attention(q, kv, w_q_scaled, w_kv, w_out, b_out, head_mask, batch_mask):
    Bsz, Lq, C = q.shape
    Lkv = kv.shape[1]
    # Fold batch into rows for the projections (free host-side reshapes).
    q2 = q.reshape(Bsz * Lq, C)
    kv2 = kv.reshape(Bsz * Lkv, C)

    kernel = functools.partial(_cross_attn_kernel,
                               batch=Bsz, lq=Lq, lkv=Lkv, heads=HEADS)
    out2 = pl.pallas_call(
        kernel,
        out_shape=jax.ShapeDtypeStruct((Bsz * Lq, C), q.dtype),
        # Single gridless invocation: whole working set (~40 KiB) lives in VMEM.
        in_specs=[pl.BlockSpec(memory_space=pltpu.MemorySpace.VMEM)] * 8,
        out_specs=pl.BlockSpec(memory_space=pltpu.MemorySpace.VMEM),
    )(q2, kv2, w_q_scaled, w_kv, w_out, b_out, head_mask, batch_mask)
    return out2.reshape(Bsz, Lq, C)


# --------------------------- pure-JAX reference -------------------------------
def cross_attention_ref(q, kv, w_q, w_kv, w_out, b_out):
    Bsz, Lq, C = q.shape
    Lkv = kv.shape[1]
    qp = q @ w_q                                              # (B, Lq, C)
    kvp = kv @ w_kv                                           # (B, Lkv, 2C)
    kp, vp = kvp[..., :C], kvp[..., C:]

    def to_heads(t, Lx):
        return t.reshape(Bsz, Lx, HEADS, HEAD_DIM).transpose(0, 2, 1, 3)

    qh, kh, vh = to_heads(qp, Lq), to_heads(kp, Lkv), to_heads(vp, Lkv)
    s = jnp.einsum("bhqd,bhkd->bhqk", qh, kh) / math.sqrt(HEAD_DIM)
    p = jax.nn.softmax(s, axis=-1)
    o = jnp.einsum("bhqk,bhkd->bhqd", p, vh)                  # (B, H, Lq, hd)
    o = o.transpose(0, 2, 1, 3).reshape(Bsz, Lq, C)
    return o @ w_out + b_out


# ------------------------------- main ----------------------------------------
if __name__ == "__main__":
    key = jax.random.PRNGKey(0)
    k_q, k_kv, k_wq, k_wkv, k_wo, k_bo = jax.random.split(key, 6)

    bound = 1.0 / math.sqrt(DIM)  # nn.Linear-like init scale
    q = jax.random.normal(k_q, (B, LQ, DIM), dtype=jnp.float32)
    kv = jax.random.normal(k_kv, (B, LKV, DIM), dtype=jnp.float32)
    w_q = jax.random.uniform(k_wq, (DIM, DIM), jnp.float32, -bound, bound)
    w_kv = jax.random.uniform(k_wkv, (DIM, 2 * DIM), jnp.float32, -bound, bound)
    w_out = jax.random.uniform(k_wo, (DIM, DIM), jnp.float32, -bound, bound)
    b_out = jax.random.uniform(k_bo, (1, DIM), jnp.float32, -bound, bound)

    # One-time host-side constant preprocessing (done once, outside the jitted
    # call path): fold the 1/sqrt(head_dim) scale into the q_proj weight and
    # build the block-diagonal head mask + additive cross-batch score mask.
    w_q_scaled = w_q * jnp.float32(1.0 / math.sqrt(HEAD_DIM))
    head_mask, batch_mask = build_attn_constants(B, LQ, LKV, HEADS, HEAD_DIM)

    out = cross_attention(q, kv, w_q_scaled, w_kv, w_out, b_out,
                          head_mask, batch_mask)
    out = jax.block_until_ready(out)

    ref = cross_attention_ref(q, kv, w_q, w_kv, w_out, b_out)
    assert out.shape == (B, LQ, DIM)
    # Tolerance accounts for bf16 MXU operands on the attention matmuls
    # (~3 decimal digits) plus the approximate (EUP) softmax reciprocal.
    assert jnp.allclose(out, ref, atol=1e-2, rtol=1e-2), "mismatch vs reference"

    print("KERNEL_OK")
</pallas_src>

<mosaic_0001>
module attributes {stable_mosaic.version = 11 : i64} {
  func.func @_cross_attn_kernel(%arg0: memref<16x32xf32, #tpu.memory_space<vmem>>, %arg1: memref<32x32xf32, #tpu.memory_space<vmem>>, %arg2: memref<32x32xf32, #tpu.memory_space<vmem>>, %arg3: memref<32x64xf32, #tpu.memory_space<vmem>>, %arg4: memref<32x32xf32, #tpu.memory_space<vmem>>, %arg5: memref<1x32xf32, #tpu.memory_space<vmem>>, %arg6: memref<128x32xf32, #tpu.memory_space<vmem>>, %arg7: memref<128x32xf32, #tpu.memory_space<vmem>>, %arg8: memref<16x32xf32, #tpu.memory_space<vmem>>) attributes {dimension_semantics = [], scalar_prefetch = 0 : i64, scratch_operands = 0 : i64, tpu.core_type = #tpu.core_type<tc>} {
    %c0 = arith.constant 0 : index
    %c0_0 = arith.constant 0 : index
    %0 = vector.load %arg0[%c0, %c0_0] : memref<16x32xf32, #tpu.memory_space<vmem>>, vector<16x32xf32>
    %c0_1 = arith.constant 0 : index
    %c0_2 = arith.constant 0 : index
    %1 = vector.load %arg2[%c0_1, %c0_2] : memref<32x32xf32, #tpu.memory_space<vmem>>, vector<32x32xf32>
    %cst = arith.constant dense<0.000000e+00> : vector<16x32xf32>
    %2 = tpu.matmul %0, %1, %cst {dimension_numbers = #tpu.dot_dimension_numbers<[1], [0], [0], [1], [0, 0, 1, 1], [], []>} : vector<16x32xf32>, vector<32x32xf32>, vector<16x32xf32> -> vector<16x32xf32>
    %c0_3 = arith.constant 0 : index
    %c0_4 = arith.constant 0 : index
    %3 = vector.load %arg1[%c0_3, %c0_4] : memref<32x32xf32, #tpu.memory_space<vmem>>, vector<32x32xf32>
    %c0_5 = arith.constant 0 : index
    %c0_6 = arith.constant 0 : index
    %4 = vector.load %arg3[%c0_5, %c0_6] : memref<32x64xf32, #tpu.memory_space<vmem>>, vector<32x64xf32>
    %cst_7 = arith.constant dense<0.000000e+00> : vector<32x64xf32>
    %5 = tpu.matmul %3, %4, %cst_7 {dimension_numbers = #tpu.dot_dimension_numbers<[1], [0], [0], [1], [0, 0, 1, 1], [], []>} : vector<32x32xf32>, vector<32x64xf32>, vector<32x64xf32> -> vector<32x64xf32>
    %6 = vector.extract_strided_slice %5 {offsets = [0, 0], sizes = [32, 32], strides = [1, 1]} : vector<32x64xf32> to vector<32x32xf32>
    %7 = vector.extract_strided_slice %5 {offsets = [0, 32], sizes = [32, 32], strides = [1, 1]} : vector<32x64xf32> to vector<32x32xf32>
    %c0_8 = arith.constant 0 : index
    %c0_9 = arith.constant 0 : index
    %8 = vector.load %arg6[%c0_8, %c0_9] : memref<128x32xf32, #tpu.memory_space<vmem>>, vector<128x32xf32>
    %9 = vector.shape_cast %2 : vector<16x32xf32> to vector<2x1x8x32xf32>
    %10 = vector.shape_cast %9 : vector<2x1x8x32xf32> to vector<2x1x8x32xf32>
    %11 = vector.broadcast %10 : vector<2x1x8x32xf32> to vector<2x8x8x32xf32>
    %12 = vector.shape_cast %11 : vector<2x8x8x32xf32> to vector<128x32xf32>
    %13 = arith.mulf %12, %8 : vector<128x32xf32>
    %14 = tpu.transpose %6, [1, 0] : vector<32x32xf32> -> vector<32x32xf32>
    %15 = arith.truncf %13 : vector<128x32xf32> to vector<128x32xbf16>
    %16 = arith.truncf %14 : vector<32x32xf32> to vector<32x32xbf16>
    %cst_10 = arith.constant dense<0.000000e+00> : vector<128x32xf32>
    %17 = tpu.matmul %15, %16, %cst_10 {dimension_numbers = #tpu.dot_dimension_numbers<[1], [0], [0], [1], [0, 0, 1, 1], [], []>} : vector<128x32xbf16>, vector<32x32xbf16>, vector<128x32xf32> -> vector<128x32xf32>
    %c0_11 = arith.constant 0 : index
    %c0_12 = arith.constant 0 : index
    %18 = vector.load %arg7[%c0_11, %c0_12] : memref<128x32xf32, #tpu.memory_space<vmem>>, vector<128x32xf32>
    %19 = arith.addf %17, %18 : vector<128x32xf32>
    %cst_13 = arith.constant dense<0xFF800000> : vector<128xf32>
    %20 = vector.multi_reduction <maximumf>, %19, %cst_13 [1] : vector<128x32xf32> to vector<128xf32>
    %21 = vector.shape_cast %20 : vector<128xf32> to vector<128x1xf32>
    %22 = vector.broadcast %21 : vector<128x1xf32> to vector<128x32xf32>
    %23 = arith.subf %19, %22 : vector<128x32xf32>
    %24 = math.exp %23 : vector<128x32xf32>
    %cst_14 = arith.constant dense<0.000000e+00> : vector<128xf32>
    %25 = vector.multi_reduction <add>, %24, %cst_14 [1] : vector<128x32xf32> to vector<128xf32>
    %26 = vector.shape_cast %25 : vector<128xf32> to vector<128x1xf32>
    %27 = tpu.reciprocal %26 {approx = true} : vector<128x1xf32> -> vector<128x1xf32>
    %28 = vector.broadcast %27 : vector<128x1xf32> to vector<128x32xf32>
    %29 = arith.mulf %24, %28 : vector<128x32xf32>
    %30 = arith.truncf %29 : vector<128x32xf32> to vector<128x32xbf16>
    %31 = arith.truncf %7 : vector<32x32xf32> to vector<32x32xbf16>
    %cst_15 = arith.constant dense<0.000000e+00> : vector<128x32xf32>
    %32 = tpu.matmul %30, %31, %cst_15 {dimension_numbers = #tpu.dot_dimension_numbers<[1], [0], [0], [1], [0, 0, 1, 1], [], []>} : vector<128x32xbf16>, vector<32x32xbf16>, vector<128x32xf32> -> vector<128x32xf32>
    %33 = arith.mulf %32, %8 : vector<128x32xf32>
    %34 = vector.shape_cast %33 : vector<128x32xf32> to vector<2x8x8x32xf32>
    %cst_16 = arith.constant dense<0.000000e+00> : vector<2x8x32xf32>
    %35 = vector.multi_reduction <add>, %34, %cst_16 [1] : vector<2x8x8x32xf32> to vector<2x8x32xf32>
    %36 = vector.shape_cast %35 : vector<2x8x32xf32> to vector<16x32xf32>
    %c0_17 = arith.constant 0 : index
    %c0_18 = arith.constant 0 : index
    %37 = vector.load %arg4[%c0_17, %c0_18] : memref<32x32xf32, #tpu.memory_space<vmem>>, vector<32x32xf32>
    %cst_19 = arith.constant dense<0.000000e+00> : vector<16x32xf32>
    %38 = tpu.matmul %36, %37, %cst_19 {dimension_numbers = #tpu.dot_dimension_numbers<[1], [0], [0], [1], [0, 0, 1, 1], [], []>} : vector<16x32xf32>, vector<32x32xf32>, vector<16x32xf32> -> vector<16x32xf32>
    %c0_20 = arith.constant 0 : index
    %c0_21 = arith.constant 0 : index
    %39 = vector.load %arg5[%c0_20, %c0_21] : memref<1x32xf32, #tpu.memory_space<vmem>>, vector<1x32xf32>
    %40 = vector.broadcast %39 : vector<1x32xf32> to vector<16x32xf32>
    %41 = arith.addf %38, %40 : vector<16x32xf32>
    %c0_22 = arith.constant 0 : index
    %c0_23 = arith.constant 0 : index
    %42 = vector.load %arg8[%c0_22, %c0_23] : memref<16x32xf32, #tpu.memory_space<vmem>>, vector<16x32xf32>
    tpu.vector_store %arg8[%c0_22, %c0_23], %41 {strides = array<i32>} : memref<16x32xf32, #tpu.memory_space<vmem>>, vector<16x32xf32>,
    return
  }
}

</mosaic_0001>

<bundles_post_ra>
// kernel: cross_attention.1
= control target key start
LH: loop header
LB: loop body
LE: loop exit
PB: predicated region body
PF: predicated region fallthrough
CT: control target
= control target key end

     0   :  { %vm37_vm0 = vcmask 261120   ;;  %s1666_s0 = inlined_call_operand.vmem [shape: f32[16,32], index: 0, kind: input, shape index: {}]   ;;  %s1667_s1 = inlined_call_operand.vmem [shape: f32[32,32], index: 1, kind: input, shape index: {}]   ;;  %s1668_s2 = inlined_call_operand.vmem [shape: f32[32,32], index: 2, kind: input, shape index: {}]   ;;  %s1669_s3 = inlined_call_operand.vmem [shape: f32[32,64], index: 3, kind: input, shape index: {}]   ;;  %s1670_s4 = inlined_call_operand.vmem [shape: f32[32,32], index: 4, kind: input, shape index: {}]   ;;  %s1671_s5 = inlined_call_operand.vmem [shape: f32[1,32], index: 5, kind: input, shape index: {}]   ;;  %s1672_s6 = inlined_call_operand.vmem [shape: f32[128,32], index: 6, kind: input, shape index: {}]   ;;  %s1673_s7 = inlined_call_operand.vmem [shape: f32[128,32], index: 7, kind: input, shape index: {}]   ;;  %s1674_s8 = inlined_call_operand.hbm [shape: f32[16,32], index: 8, kind: output, shape index: {}]  }
   0x1   :  { %v123_v0 = vld [vmem:[%s1669_s3] sm:$0xff]  ;;  %v124_v1 = vld [vmem:[%s1669_s3 + $0x8] sm:$0xff]  ;;  %v125_v2 = vld [vmem:[%s1669_s3 + $0x10] sm:$0xff] }
   0x2   :  { %v1055_v3 = vpack.c.bf16 %v124_v1, %v123_v0  ;;  %v126_v4 = vld [vmem:[%s1669_s3 + $0x18] sm:$0xff]  ;;  %v119_v5 = vld [vmem:[%s1667_s1] sm:$0xff]  ;;  %v34_v8 = vld [vmem:[%s1668_s2 + $0x8] sm:$0xff] }
   0x3   :  { %v1059_v6 = vpack.c.bf16 %v126_v4, %v125_v2  ;;  %990 = vmatprep.mubr.msk.f32.mxu1 %vm37_vm0, %v119_v5  ;;  %v33_v7 = vld [vmem:[%s1668_s2] sm:$0xff]  ;;  %v35_v9 = vld [vmem:[%s1668_s2 + $0x10] sm:$0xff]  ;;  %v36_v10 = vld [vmem:[%s1668_s2 + $0x18] sm:$0xff] }
   0x4   :  { %1056 = vmatprep.subr.bf16.mxu1 %v1055_v3  ;;  %v1047_v11 = vpack.c.bf16 %v34_v8, %v33_v7  ;;  %v1051_v12 = vpack.c.bf16 %v36_v10, %v35_v9  ;;  %v31_v13 = vld [vmem:[%s1666_s0] sm:$0xff] }
   0x5   :  { %1058 = vmatpush3.bf16.msra.mxu1 %v1055_v3 }
   0x6   :  { %13 = vsyncpa [#allocation3], 0  ;;  %1060 = vmatprep.subr.bf16.mxu1 %v1059_v6  ;;  %979 = vmatprep.mubr.msk.f32.mxu0 %vm37_vm0, %v31_v13  ;;  %v120_v14 = vld [vmem:[%s1667_s1 + $0x8] sm:$0xff]  ;;  %v121_v15 = vld [vmem:[%s1667_s1 + $0x10] sm:$0xff]  ;;  %s1165_s25 = smov [#allocation2]  }
   0x7   :  { %1048 = vmatprep.subr.bf16.mxu0 %v1047_v11  ;;  %v32_v16 = vld [vmem:[%s1666_s0 + $0x8] sm:$0xff]  ;;  %v122_v17 = vld [vmem:[%s1667_s1 + $0x18] sm:$0xff]  ;;  %v1280_v26 = vld [vmem:[%s1672_s6] sm:$0xff]  ;;  %s895_s2 = sshll.u32 %s1165_s25, 4  ;;  %s896_s2 = int_to_ptr.vmem [resolvable:$true] %s895_s2 }
   0x8   :  { %1050 = vmatpush3.bf16.msra.mxu0 %v1047_v11  ;;  %v1285_v27 = vld [vmem:[%s1672_s6 + $0x8] sm:$0xff]  ;;  %v1293_v35 = vld [vmem:[%s1672_s6 + $0x10] sm:$0xff]  ;;  %v1298_v36 = vld [vmem:[%s1672_s6 + $0x18] sm:$0xff]  ;;  %s1140_s26 = scalar_lea.vmem %s896_s2, 256  ;;  %p1145_p1 = scmp.lt.s32.totalorder %s896_s2, %s896_s2 }
   0x9   :  { %1062 = vmatpush3.bf16.msra.mxu1 %v1059_v6  ;;  %1052 = vmatprep.subr.bf16.mxu0 %v1051_v12  ;;  %v1303_v37 = vld [vmem:[%s1672_s6 + $0x20] sm:$0xff]  ;;  %v1308_v38 = vld [vmem:[%s1672_s6 + $0x28] sm:$0xff]  ;;  %v1317_v47 = vld [vmem:[%s1672_s6 + $0x30] sm:$0xff]  ;;  %p1141_p0 = scmp.ne.s32.totalorder %s896_s2, %s1140_s26  ;;  %p1146_p2 = scmp.lt.s32.totalorder %s1140_s26, %s1140_s26 }
   0xa   :  { %v1322_v48 = vld [vmem:[%s1672_s6 + $0x38] sm:$0xff]  ;;  %v1328_v49 = vld [vmem:[%s1672_s6 + $0x40] sm:$0xff]  ;;  %v1333_v50 = vld [vmem:[%s1672_s6 + $0x48] sm:$0xff] }
   0xb   :  { %v1343_v57 = vld [vmem:[%s1672_s6 + $0x50] sm:$0xff]  ;;  %v1348_v58 = vld [vmem:[%s1672_s6 + $0x58] sm:$0xff]  ;;  %v1354_v59 = vld [vmem:[%s1672_s6 + $0x60] sm:$0xff]  ;;  %p1147_p3 = por %p1146_p2, %p1145_p1 }
   0xc   :  { %991 = vmatmul.mubr.msk.f32.vlgmr.msra.gmra.mrb[0].mxu1 %vm37_vm0, %v120_v14  ;;  %1054 = vmatpush3.bf16.msra.mxu0 %v1051_v12  ;;  %v1359_v60 = vld [vmem:[%s1672_s6 + $0x68] sm:$0xff]  ;;  %v1369_v3 = vld [vmem:[%s1672_s6 + $0x70] sm:$0xff]  ;;  %v1374_v4 = vld [vmem:[%s1672_s6 + $0x78] sm:$0xff] }
   0xd   :  { %993 = vmatprep.mubr.msk.f32.mxu1 %vm37_vm0, %v121_v15  ;;  %v300_v8 = vld [vmem:[%s1673_s7 + $0x10] sm:$0xff]  ;;  %v298_v10 = vld [vmem:[%s1673_s7] sm:$0xff]  ;;  %p1148_p4 = pnand %p1147_p3, %p1141_p0 }
   0xf   :  { %980 = vmatmul.mubr.msk.f32.vlgmr.msra.gmra.mrb[0].mxu0 %vm37_vm0, %v32_v16 }
  0x10   :  { %994 = vmatmul.mubr.msk.f32.gmra.mrb[2].mxu1 %vm37_vm0, %v122_v17  ;;  %v301_v17 = vld [vmem:[%s1673_s7 + $0x18] sm:$0xff] }
  0xdf   :  { %v1261_v18 = vpop.f32.mrb[0].mxu1 }
  0xe0   :  { %v1263_v19 = vpop.f32.mrb[1].mxu1 }
  0xe1   :  { %v619_v20 = vpack.c.bf16 %v1261_v18, %v1263_v19  ;;  %256 = vxpose.xlu0.b32.start [1/4] (short) (narrow) %v1263_v19, 32 }
  0xe2   :  { %v981_v24 = vpop.f32.mrb[0].mxu0 }
  0xe3   :  { %v1268_v21 = vpop.f32.mrb[2].mxu1  ;;  %v110_v25 = vpop.f32.mrb[1].mxu0  ;;  %v248_v53 = vmul.f32 %v981_v24, %v1328_v49  ;;  %v249_v54 = vmul.f32 %v981_v24, %v1333_v50  ;;  %v250_v61 = vmul.f32 %v981_v24, %v1343_v57  ;;  %v251_v62 = vmul.f32 %v981_v24, %v1348_v58 }
  0xe4   :  { %v1270_v22 = vpop.f32.mrb[3].mxu1  ;;  %v240_v28 = vmul.f32 %v1280_v26, %v110_v25  ;;  %v241_v29 = vmul.f32 %v1285_v27, %v110_v25  ;;  %v242_v41 = vmul.f32 %v1293_v35, %v110_v25  ;;  %v243_v42 = vmul.f32 %v1298_v36, %v110_v25 }
  0xe5   :  { %257 = vxpose.xlu0.b32.cont [2/4] (short) (narrow) %v1261_v18, 32  ;;  %v620_v23 = vpack.c.bf16 %v1268_v21, %v1270_v22  ;;  %v244_v43 = vmul.f32 %v1303_v37, %v110_v25  ;;  %v245_v44 = vmul.f32 %v1308_v38, %v110_v25  ;;  %v246_v51 = vmul.f32 %v1317_v47, %v110_v25 }
  0xe6   :  { %v288_v30 = vpack.c.bf16 %v241_v29, %v240_v28  ;;  %v289_v45 = vpack.c.bf16 %v243_v42, %v242_v41  ;;  %v247_v52 = vmul.f32 %v1322_v48, %v110_v25  ;;  %v292_v56 = vpack.c.bf16 %v249_v54, %v248_v53  ;;  %v302_v28 = vld [vmem:[%s1673_s7 + $0x20] sm:$0xff]  ;;  %v299_v29 = vld [vmem:[%s1673_s7 + $0x8] sm:$0xff]  ;;  %v304_v41 = vld [vmem:[%s1673_s7 + $0x30] sm:$0xff] }
  0xe7   :  { %v290_v46 = vpack.c.bf16 %v245_v44, %v244_v43  ;;  %v252_v63 = vmul.f32 %v981_v24, %v1354_v59  ;;  %v253_v0 = vmul.f32 %v981_v24, %v1359_v60  ;;  %v293_v1 = vpack.c.bf16 %v251_v62, %v250_v61 }
  0xe8   :  { %1000 = vmatprep.mubr.msk.bf16.mxu0 %vm37_vm0, %v288_v30  ;;  %v291_v55 = vpack.c.bf16 %v247_v52, %v246_v51  ;;  %v254_v5 = vmul.f32 %v981_v24, %v1369_v3  ;;  %v255_v6 = vmul.f32 %v981_v24, %v1374_v4 }
  0xe9   :  { %258 = vxpose.xlu0.b32.cont [3/4] (short) (narrow) %v1270_v22, 32  ;;  %v294_v2 = vpack.c.bf16 %v253_v0, %v252_v63  ;;  %v308_v63 = vld [vmem:[%s1673_s7 + $0x50] sm:$0xff] }
  0xea   :  { %v295_v7 = vpack.c.bf16 %v255_v6, %v254_v5 }
  0xed   :  { %259 = vxpose.xlu0.b32.end [4/4] (short) (narrow) %v1268_v21, 32 }
 0x161   :  { %v272_v31 = vpop.trf.xlu0 }
 0x165   :  { %v273_v32 = vpop.trf.xlu0 }
 0x166   :  { %v296_v33 = vpack.c.bf16 %v273_v32, %v272_v31 }
 0x168   :  { %996 = vmatprep.subr.bf16.mxu0 %v296_v33 }
 0x169   :  { %v274_v34 = vpop.trf.xlu0  ;;  %997 = vmatpush3.bf16.msra.mxu0 %v296_v33 }
 0x16d   :  { %v275_v39 = vpop.trf.xlu0 }
 0x16e   :  { %v297_v40 = vpack.c.bf16 %v275_v39, %v274_v34 }
 0x170   :  { %998 = vmatprep.subr.bf16.mxu0 %v297_v40 }
 0x171   :  { %999 = vmatpush3.bf16.msra.mxu0 %v297_v40 }
 0x174   :  { %1001 = vmatmul.mubr.msk.bf16.vlgmr.msra.gmra.mrb[4].mxu0 %vm37_vm0, %v289_v45  ;;  %v305_v45 = vld [vmem:[%s1673_s7 + $0x38] sm:$0xff] }
 0x175   :  { %1004 = vmatprep.mubr.msk.bf16.mxu0 %vm37_vm0, %v290_v46 }
 0x17c   :  { %1005 = vmatmul.mubr.msk.bf16.gmra.mrb[8].mxu0 %vm37_vm0, %v291_v55 }
 0x17d   :  { %1008 = vmatprep.mubr.msk.bf16.mxu0 %vm37_vm0, %v292_v56  ;;  %v303_v56 = vld [vmem:[%s1673_s7 + $0x28] sm:$0xff] }
 0x184   :  { %1009 = vmatmul.mubr.msk.bf16.gmra.mrb[12].mxu0 %vm37_vm0, %v293_v1 }
 0x185   :  { %1012 = vmatprep.mubr.msk.bf16.mxu0 %vm37_vm0, %v294_v2 }
 0x18c   :  { %1013 = vmatmul.mubr.msk.bf16.gmra.mrb[16].mxu0 %vm37_vm0, %v295_v7 }
 0x247   :  { %v1002_v9 = vpop.f32.mrb[4].mxu0 }
 0x248   :  { %v1387_v11 = vadd.f32 %v1002_v9, %v300_v8  ;;  %v372_v12 = vpop.f32.mrb[5].mxu0  ;;  %v306_v8 = vld [vmem:[%s1673_s7 + $0x40] sm:$0xff] }
 0x249   :  { %v1003_v13 = vpop.f32.mrb[6].mxu0  ;;  %v1389_v14 = vadd.f32 %v372_v12, %v298_v10  ;;  %v309_v12 = vld [vmem:[%s1673_s7 + $0x58] sm:$0xff] }
 0x24a   :  { %v375_v15 = vpop.f32.mrb[7].mxu0  ;;  %v441_v16 = vsel %vm37_vm0, %v1387_v11, -inf  ;;  %v1396_v24 = vadd.f32 %v1003_v13, %v301_v17 }
 0x24b   :  { %442 = vmax.xlane.f32.xlu1 %v441_v16  ;;  %v435_v25 = vsel %vm37_vm0, %v1389_v14, -inf  ;;  %v1408_v34 = vadd.f32 %v375_v15, %v299_v29  ;;  %v307_v16 = vld [vmem:[%s1673_s7 + $0x48] sm:$0xff] }
 0x24c   :  { %v444_v40 = vsel %vm37_vm0, %v1396_v24, -inf }
 0x24d   :  { %v438_v44 = vsel %vm37_vm0, %v1408_v34, -inf }
 0x24f   :  { %v1006_v30 = vpop.f32.mrb[8].mxu0  ;;  %436 = vmax.xlane.f32.xlu1 %v435_v25 }
 0x250   :  { %v388_v31 = vpop.f32.mrb[9].mxu0  ;;  %v1417_v43 = vadd.f32 %v1006_v30, %v304_v41 }
 0x251   :  { %v1406_v32 = vadd.f32 %v388_v31, %v302_v28  ;;  %v1007_v33 = vpop.f32.mrb[10].mxu0  ;;  %v312_v28 = vld [vmem:[%s1673_s7 + $0x70] sm:$0xff]  ;;  %v310_v31 = vld [vmem:[%s1673_s7 + $0x60] sm:$0xff] }
 0x252   :  { %v391_v39 = vpop.f32.mrb[11].mxu0  ;;  %v1424_v53 = vadd.f32 %v1007_v33, %v305_v45  ;;  %v453_v55 = vsel %vm37_vm0, %v1417_v43, -inf }
 0x253   :  { %445 = vmax.xlane.f32.xlu1 %v444_v40  ;;  %v447_v42 = vsel %vm37_vm0, %v1406_v32, -inf  ;;  %v1431_v61 = vadd.f32 %v391_v39, %v303_v56  ;;  %v311_v40 = vld [vmem:[%s1673_s7 + $0x68] sm:$0xff] }
 0x254   :  { %448 = vmax.xlane.f32.xlu0 %v447_v42  ;;  %v456_v62 = vsel %vm37_vm0, %v1424_v53, -inf }
 0x255   :  { %v450_v7 = vsel %vm37_vm0, %v1431_v61, -inf }
 0x257   :  { %v1010_v46 = vpop.f32.mrb[12].mxu0  ;;  %439 = vmax.xlane.f32.xlu1 %v438_v44  ;;  %v313_v44 = vld [vmem:[%s1673_s7 + $0x78] sm:$0xff]  ;;  %s1164_s7 = smov 96  }
 0x258   :  { %v404_v51 = vpop.f32.mrb[13].mxu0  ;;  %v1438_v5 = vadd.f32 %v1010_v46, %v308_v63 }
 0x259   :  { %v1011_v52 = vpop.f32.mrb[14].mxu0  ;;  %v1445_v9 = vadd.f32 %v404_v51, %v306_v8 }
 0x25a   :  { %v407_v54 = vpop.f32.mrb[15].mxu0  ;;  %v465_v10 = vsel %vm37_vm0, %v1438_v5, -inf  ;;  %v1452_v13 = vadd.f32 %v1011_v52, %v309_v12 }
 0x25b   :  { %454 = vmax.xlane.f32.xlu1 %v453_v55  ;;  %v459_v15 = vsel %vm37_vm0, %v1445_v9, -inf  ;;  %v1459_v17 = vadd.f32 %v407_v54, %v307_v16 }
 0x25c   :  { %v468_v25 = vsel %vm37_vm0, %v1452_v13, -inf }
 0x25d   :  { %v462_v30 = vsel %vm37_vm0, %v1459_v17, -inf }
 0x25f   :  { %v1014_v0 = vpop.f32.mrb[16].mxu0  ;;  %457 = vmax.xlane.f32.xlu1 %v456_v62 }
 0x260   :  { %v420_v1 = vpop.f32.mrb[17].mxu0  ;;  %v1466_v29 = vadd.f32 %v1014_v0, %v312_v28 }
 0x261   :  { %v1015_v2 = vpop.f32.mrb[18].mxu0  ;;  %v1473_v33 = vadd.f32 %v420_v1, %v310_v31 }
 0x262   :  { %v423_v6 = vpop.f32.mrb[19].mxu0  ;;  %v477_v39 = vsel %vm37_vm0, %v1466_v29, -inf  ;;  %v1487_v45 = vadd.f32 %v1015_v2, %v313_v44 }
 0x263   :  { %451 = vmax.xlane.f32.xlu1 %v450_v7  ;;  %v1480_v41 = vadd.f32 %v423_v6, %v311_v40  ;;  %v471_v42 = vsel %vm37_vm0, %v1473_v33, -inf }
 0x264   :  { %v480_v51 = vsel %vm37_vm0, %v1487_v45, -inf }
 0x265   :  { %v474_v46 = vsel %vm37_vm0, %v1480_v41, -inf }
 0x267   :  { %466 = vmax.xlane.f32.xlu1 %v465_v10 }
 0x26b   :  { %460 = vmax.xlane.f32.xlu1 %v459_v15 }
 0x26f   :  { %469 = vmax.xlane.f32.xlu1 %v468_v25 }
 0x273   :  { %463 = vmax.xlane.f32.xlu1 %v462_v30 }
 0x277   :  { %478 = vmax.xlane.f32.xlu1 %v477_v39 }
 0x27b   :  { %472 = vmax.xlane.f32.xlu1 %v471_v42 }
 0x27f   :  { %475 = vmax.xlane.f32.xlu1 %v474_v46 }
 0x283   :  { %481 = vmax.xlane.f32.xlu1 %v480_v51 }
 0x2d8   :  { %v443_v52 = vpop.xlane.xlu1 %442 }
 0x2d9   :  { %v485_v54 = vsub.f32 %v1387_v11, %v443_v52 }
 0x2db   :  { %v503_v55 = vmul.f32 1.442695, %v485_v54 }
 0x2dc   :  { %v437_v56 = vpop.xlane.xlu1 %436 }
 0x2dd   :  { %1076 = vpow2.f32 %v503_v55  ;;  %v483_v62 = vsub.f32 %v1389_v14, %v437_v56 }
 0x2df   :  { %v499_v63 = vmul.f32 1.442695, %v483_v62 }
 0x2e0   :  { %v446_v0 = vpop.xlane.xlu1 %445 }
 0x2e1   :  { %1078 = vpow2.f32 %v499_v63  ;;  %v486_v1 = vsub.f32 %v1396_v24, %v446_v0  ;;  %v449_v6 = vpop.xlane.xlu0 %448 }
 0x2e2   :  { %v487_v11 = vsub.f32 %v1406_v32, %v449_v6 }
 0x2e3   :  { %v505_v2 = vmul.f32 1.442695, %v486_v1 }
 0x2e4   :  { %v440_v7 = vpop.xlane.xlu1 %439  ;;  %v507_v25 = vmul.f32 1.442695, %v487_v11 }
 0x2e5   :  { %1080 = vpow2.f32 %v505_v2  ;;  %v484_v8 = vsub.f32 %v1408_v34, %v440_v7 }
 0x2e7   :  { %v1497_v10 = vpop.eup %1076  ;;  %v501_v12 = vmul.f32 1.442695, %v484_v8 }
 0x2e8   :  { %v455_v15 = vpop.xlane.xlu1 %454  ;;  %v537_v14 = vsel %vm37_vm0, %v1497_v10, 0.0 }
 0x2e9   :  { %1082 = vpow2.f32 %v501_v12  ;;  %v489_v16 = vsub.f32 %v1417_v43, %v455_v15  ;;  %538 = vadd.xlane.f32.xlu1 %v537_v14 }
 0x2eb   :  { %v1503_v24 = vpop.eup %1078  ;;  %v511_v28 = vmul.f32 1.442695, %v489_v16 }
 0x2ec   :  { %v458_v30 = vpop.xlane.xlu1 %457  ;;  %v531_v34 = vsel %vm37_vm0, %v1503_v24, 0.0 }
 0x2ed   :  { %1084 = vpow2.f32 %v511_v28  ;;  %v490_v32 = vsub.f32 %v1424_v53, %v458_v30  ;;  %532 = vadd.xlane.f32.xlu1 %v531_v34 }
 0x2ee   :  { %1086 = vpow2.f32 %v507_v25 }
 0x2ef   :  { %v1508_v31 = vpop.eup %1080  ;;  %v513_v39 = vmul.f32 1.442695, %v490_v32 }
 0x2f0   :  { %v452_v40 = vpop.xlane.xlu1 %451  ;;  %v540_v43 = vsel %vm37_vm0, %v1508_v31, 0.0 }
 0x2f1   :  { %1088 = vpow2.f32 %v513_v39  ;;  %v488_v42 = vsub.f32 %v1431_v61, %v452_v40  ;;  %541 = vadd.xlane.f32.xlu0 %v540_v43 }
 0x2f3   :  { %v1513_v44 = vpop.eup %1082  ;;  %v509_v46 = vmul.f32 1.442695, %v488_v42 }
 0x2f4   :  { %v467_v51 = vpop.xlane.xlu1 %466  ;;  %v534_v53 = vsel %vm37_vm0, %v1513_v44, 0.0 }
 0x2f5   :  { %1090 = vpow2.f32 %v509_v46  ;;  %v493_v52 = vsub.f32 %v1438_v5, %v467_v51  ;;  %535 = vadd.xlane.f32.xlu0 %v534_v53 }
 0x2f7   :  { %v1518_v54 = vpop.eup %1084  ;;  %v519_v55 = vmul.f32 1.442695, %v493_v52 }
 0x2f8   :  { %v461_v56 = vpop.xlane.xlu1 %460  ;;  %v549_v62 = vsel %vm37_vm0, %v1518_v54, 0.0  ;;  %v1522_v61 = vpop.eup %1086 }
 0x2f9   :  { %1092 = vpow2.f32 %v519_v55  ;;  %v491_v63 = vsub.f32 %v1445_v9, %v461_v56  ;;  %550 = vadd.xlane.f32.xlu1 %v549_v62  ;;  %v543_v5 = vsel %vm37_vm0, %v1522_v61, 0.0 }
 0x2fb   :  { %v1525_v0 = vpop.eup %1088  ;;  %v515_v1 = vmul.f32 1.442695, %v491_v63 }
 0x2fc   :  { %v470_v2 = vpop.xlane.xlu1 %469  ;;  %v552_v6 = vsel %vm37_vm0, %v1525_v0, 0.0 }
 0x2fd   :  { %1094 = vpow2.f32 %v515_v1  ;;  %v494_v7 = vsub.f32 %v1452_v13, %v470_v2  ;;  %544 = vadd.xlane.f32.xlu1 %v543_v5  ;;  %553 = vadd.xlane.f32.xlu0 %v552_v6 }
 0x2ff   :  { %v1532_v8 = vpop.eup %1090  ;;  %v521_v11 = vmul.f32 1.442695, %v494_v7 }
 0x300   :  { %v464_v9 = vpop.xlane.xlu1 %463  ;;  %v546_v12 = vsel %vm37_vm0, %v1532_v8, 0.0 }
 0x301   :  { %1096 = vpow2.f32 %v521_v11  ;;  %v492_v15 = vsub.f32 %v1459_v17, %v464_v9  ;;  %547 = vadd.xlane.f32.xlu0 %v546_v12 }
 0x303   :  { %v1537_v14 = vpop.eup %1092  ;;  %v517_v16 = vmul.f32 1.442695, %v492_v15 }
 0x304   :  { %v479_v25 = vpop.xlane.xlu1 %478  ;;  %v561_v13 = vsel %vm37_vm0, %v1537_v14, 0.0 }
 0x305   :  { %1098 = vpow2.f32 %v517_v16  ;;  %v497_v28 = vsub.f32 %v1466_v29, %v479_v25  ;;  %562 = vadd.xlane.f32.xlu1 %v561_v13 }
 0x307   :  { %v1542_v30 = vpop.eup %1094  ;;  %v527_v34 = vmul.f32 1.442695, %v497_v28 }
 0x308   :  { %v473_v32 = vpop.xlane.xlu1 %472  ;;  %v555_v39 = vsel %vm37_vm0, %v1542_v30, 0.0 }
 0x309   :  { %1100 = vpow2.f32 %v527_v34  ;;  %v495_v17 = vsub.f32 %v1473_v33, %v473_v32  ;;  %556 = vadd.xlane.f32.xlu1 %v555_v39 }
 0x30b   :  { %v1547_v40 = vpop.eup %1096  ;;  %v523_v43 = vmul.f32 1.442695, %v495_v17 }
 0x30c   :  { %v476_v42 = vpop.xlane.xlu1 %475  ;;  %v564_v46 = vsel %vm37_vm0, %v1547_v40, 0.0 }
 0x30d   :  { %1102 = vpow2.f32 %v523_v43  ;;  %565 = vadd.xlane.f32.xlu0 %v564_v46  ;;  %v496_v51 = vsub.f32 %v1480_v41, %v476_v42 }
 0x30f   :  { %v1551_v29 = vpop.eup %1098  ;;  %v525_v56 = vmul.f32 1.442695, %v496_v51 }
 0x310   :  { %v482_v53 = vpop.xlane.xlu1 %481  ;;  %v558_v52 = vsel %vm37_vm0, %v1551_v29, 0.0 }
 0x311   :  { %v498_v33 = vsub.f32 %v1487_v45, %v482_v53  ;;  %559 = vadd.xlane.f32.xlu0 %v558_v52 }
 0x313   :  { %v1557_v55 = vpop.eup %1100  ;;  %v529_v62 = vmul.f32 1.442695, %v498_v33 }
 0x314   :  { %v573_v63 = vsel %vm37_vm0, %v1557_v55, 0.0 }
 0x315   :  { %1104 = vpow2.f32 %v529_v62  ;;  %574 = vadd.xlane.f32.xlu0 %v573_v63 }
 0x316   :  { %1106 = vpow2.f32 %v525_v56 }
 0x317   :  { %v1561_v1 = vpop.eup %1102 }
 0x318   :  { %v567_v41 = vsel %vm37_vm0, %v1561_v1, 0.0 }
 0x319   :  { %568 = vadd.xlane.f32.xlu0 %v567_v41 }
 0x31a   :  { %623 = vrot.lane.b32.xlu1 %v619_v20, %s1164_s7 }
 0x31f   :  { %v1568_v45 = vpop.eup %1104 }
 0x320   :  { %v576_v2 = vsel %vm37_vm0, %v1568_v45, 0.0  ;;  %v1572_v5 = vpop.eup %1106 }
 0x321   :  { %577 = vadd.xlane.f32.xlu0 %v576_v2  ;;  %v570_v6 = vsel %vm37_vm0, %v1572_v5, 0.0 }
 0x325   :  { %571 = vadd.xlane.f32.xlu0 %v570_v6 }
 0x33b   :  { %625 = vrot.lane.b32.xlu0 %v620_v23, %s1164_s7 }
 0x376   :  { %v539_v7 = vpop.xlane.xlu1 %538 }
 0x37a   :  { %v533_v11 = vpop.xlane.xlu1 %532 }
 0x37b   :  { %1108 = vrcp.f32 %v533_v11 }
 0x37e   :  { %v542_v18 = vpop.xlane.xlu0 %541 }
 0x382   :  { %v536_v19 = vpop.xlane.xlu0 %535 }
 0x383   :  { %1110 = vrcp.f32 %v536_v19 }
 0x384   :  { %1112 = vrcp.f32 %v542_v18 }
 0x385   :  { %v1109_v9 = vpop.eup %1108 }
 0x386   :  { %v551_v20 = vpop.xlane.xlu1 %550  ;;  %v595_v16 = vmul.f32 %v1109_v9, %v1503_v24 }
 0x38a   :  { %v545_v15 = vpop.xlane.xlu1 %544  ;;  %v554_v13 = vpop.xlane.xlu0 %553 }
 0x38d   :  { %v1111_v12 = vpop.eup %1110 }
 0x38e   :  { %v596_v25 = vmul.f32 %v1111_v12, %v1513_v44  ;;  %v548_v22 = vpop.xlane.xlu0 %547  ;;  %v1113_v44 = vpop.eup %1112 }
 0x38f   :  { %1114 = vrcp.f32 %v548_v22  ;;  %v598_v52 = vmul.f32 %v1113_v44, %v1508_v31 }
 0x390   :  { %v611_v28 = vpack.c.bf16 %v596_v25, %v595_v16  ;;  %1116 = vrcp.f32 %v539_v7 }
 0x391   :  { %1118 = vrcp.f32 %v545_v15 }
 0x392   :  { %1020 = vmatprep.mubr.msk.bf16.mxu1 %vm37_vm0, %v611_v28  ;;  %v563_v21 = vpop.xlane.xlu1 %562  ;;  %1120 = vrcp.f32 %v554_v13 }
 0x396   :  { %v557_v23 = vpop.xlane.xlu1 %556 }
 0x399   :  { %v1115_v46 = vpop.eup %1114 }
 0x39a   :  { %v566_v34 = vpop.xlane.xlu0 %565  ;;  %v624_v32 = vpop.permute.xlu1 %623  ;;  %v600_v56 = vmul.f32 %v1115_v46, %v1532_v8 }
 0x39b   :  { %1016 = vmatprep.subr.bf16.mxu1 %v624_v32  ;;  %v1117_v51 = vpop.eup %1116 }
 0x39c   :  { %1017 = vmatpush3.bf16.msra.mxu1 %v624_v32  ;;  %v1119_v53 = vpop.eup %1118  ;;  %v597_v62 = vmul.f32 %v1117_v51, %v1497_v10 }
 0x39d   :  { %v599_v63 = vmul.f32 %v1119_v53, %v1522_v61  ;;  %v1121_v2 = vpop.eup %1120 }
 0x39e   :  { %v560_v39 = vpop.xlane.xlu0 %559  ;;  %v612_v41 = vpack.c.bf16 %v598_v52, %v597_v62  ;;  %v602_v10 = vmul.f32 %v1121_v2, %v1525_v0 }
 0x39f   :  { %1122 = vrcp.f32 %v560_v39  ;;  %v613_v6 = vpack.c.bf16 %v600_v56, %v599_v63 }
 0x3a0   :  { %1124 = vrcp.f32 %v551_v20 }
 0x3a1   :  { %1126 = vrcp.f32 %v557_v23 }
 0x3a2   :  { %v575_v17 = vpop.xlane.xlu0 %574  ;;  %1128 = vrcp.f32 %v566_v34 }
 0x3a6   :  { %v569_v43 = vpop.xlane.xlu0 %568 }
 0x3a9   :  { %v1123_v7 = vpop.eup %1122 }
 0x3aa   :  { %v1125_v31 = vpop.eup %1124  ;;  %v604_v11 = vmul.f32 %v1123_v7, %v1551_v29 }
 0x3ab   :  { %v1127_v8 = vpop.eup %1126  ;;  %v601_v18 = vmul.f32 %v1125_v31, %v1518_v54 }
 0x3ac   :  { %v603_v61 = vmul.f32 %v1127_v8, %v1542_v30  ;;  %v1129_v20 = vpop.eup %1128 }
 0x3ad   :  { %v614_v19 = vpack.c.bf16 %v602_v10, %v601_v18  ;;  %v606_v0 = vmul.f32 %v1129_v20, %v1547_v40  ;;  %v797_v40 = vld [vmem:[%s1670_s4 + $0x8] sm:$0xff] }
 0x3ae   :  { %v578_v24 = vpop.xlane.xlu0 %577  ;;  %v615_v9 = vpack.c.bf16 %v604_v11, %v603_v61 }
 0x3b2   :  { %v572_v42 = vpop.xlane.xlu0 %571 }
 0x3b3   :  { %1130 = vrcp.f32 %v572_v42 }
 0x3b4   :  { %1132 = vrcp.f32 %v563_v21 }
 0x3b5   :  { %1134 = vrcp.f32 %v569_v43 }
 0x3b6   :  { %v626_v33 = vpop.permute.xlu0 %625  ;;  %1136 = vrcp.f32 %v578_v24 }
 0x3b7   :  { %1018 = vmatprep.subr.bf16.mxu1 %v626_v33  ;;  %1138 = vrcp.f32 %v575_v17 }
 0x3b8   :  { %1019 = vmatpush3.bf16.msra.mxu1 %v626_v33 }
 0x3bb   :  { %1021 = vmatmul.mubr.msk.bf16.vlgmr.msra.gmra.mrb[4].mxu1 %vm37_vm0, %v612_v41 }
 0x3bc   :  { %1024 = vmatprep.mubr.msk.bf16.mxu1 %vm37_vm0, %v613_v6 }
 0x3bd   :  { %v1131_v12 = vpop.eup %1130 }
 0x3be   :  { %v1133_v15 = vpop.eup %1132  ;;  %v608_v29 = vmul.f32 %v1131_v12, %v1572_v5 }
 0x3bf   :  { %v1135_v16 = vpop.eup %1134  ;;  %v605_v54 = vmul.f32 %v1133_v15, %v1537_v14  ;;  %v796_v14 = vld [vmem:[%s1670_s4] sm:$0xff] }
 0x3c0   :  { %v607_v25 = vmul.f32 %v1135_v16, %v1561_v1  ;;  %v1137_v13 = vpop.eup %1136  ;;  %v1063_v1 = vpack.c.bf16 %v797_v40, %v796_v14 }
 0x3c1   :  { %v616_v30 = vpack.c.bf16 %v606_v0, %v605_v54  ;;  %v1139_v21 = vpop.eup %1138  ;;  %v610_v22 = vmul.f32 %v1137_v13, %v1568_v45  ;;  %v798_v45 = vld [vmem:[%s1670_s4 + $0x10] sm:$0xff] }
 0x3c2   :  { %v617_v28 = vpack.c.bf16 %v608_v29, %v607_v25  ;;  %v609_v23 = vmul.f32 %v1139_v21, %v1557_v55  ;;  %1064 = vmatprep.subr.bf16.mxu0 %v1063_v1  ;;  %v799_v55 = vld [vmem:[%s1670_s4 + $0x18] sm:$0xff] }
 0x3c3   :  { %1025 = vmatmul.mubr.msk.bf16.gmra.mrb[8].mxu1 %vm37_vm0, %v614_v19  ;;  %1066 = vmatpush3.bf16.msra.mxu0 %v1063_v1  ;;  %v1067_v5 = vpack.c.bf16 %v799_v55, %v798_v45 }
 0x3c4   :  { %1028 = vmatprep.mubr.msk.bf16.mxu1 %vm37_vm0, %v615_v9  ;;  %v618_v34 = vpack.c.bf16 %v610_v22, %v609_v23 }
 0x3c5   :  { %1068 = vmatprep.subr.bf16.mxu0 %v1067_v5 }
 0x3c7   :  { %1070 = vmatpush3.bf16.msra.mxu0 %v1067_v5 }
 0x3cb   :  { %1029 = vmatmul.mubr.msk.bf16.gmra.mrb[12].mxu1 %vm37_vm0, %v616_v30 }
 0x3cc   :  { %1032 = vmatprep.mubr.msk.bf16.mxu1 %vm37_vm0, %v617_v28 }
 0x3d3   :  { %1033 = vmatmul.mubr.msk.bf16.gmra.mrb[16].mxu1 %vm37_vm0, %v618_v34 }
 0x48e   :  { %v1022_v32 = vpop.f32.mrb[4].mxu1 }
 0x48f   :  { %v687_v39 = vpop.f32.mrb[5].mxu1  ;;  %v752_v44 = vmul.f32 %v1022_v32, %v1293_v35 }
 0x490   :  { %v750_v17 = vmul.f32 %v687_v39, %v1280_v26  ;;  %v1023_v43 = vpop.f32.mrb[6].mxu1 }
 0x491   :  { %v690_v24 = vpop.f32.mrb[7].mxu1  ;;  %v753_v51 = vmul.f32 %v1023_v43, %v1298_v36  ;;  %v769_v33 = vsel %vm37_vm0, %v752_v44, 0.0 }
 0x492   :  { %v751_v42 = vmul.f32 %v690_v24, %v1285_v27  ;;  %v766_v46 = vsel %vm37_vm0, %v750_v17, 0.0 }
 0x493   :  { %v771_v26 = vsel %vm37_vm0, %v753_v51, 0.0 }
 0x494   :  { %v767_v53 = vsel %vm37_vm0, %v751_v42, 0.0 }
 0x495   :  { %v768_v52 = vadd.f32 %v767_v53, %v766_v46 }
 0x496   :  { %v1026_v56 = vpop.f32.mrb[8].mxu1 }
 0x497   :  { %v770_v62 = vadd.f32 %v769_v33, %v768_v52  ;;  %v703_v63 = vpop.f32.mrb[9].mxu1  ;;  %v756_v27 = vmul.f32 %v1026_v56, %v1317_v47 }
 0x498   :  { %v754_v41 = vmul.f32 %v703_v63, %v1303_v37  ;;  %v1027_v2 = vpop.f32.mrb[10].mxu1 }
 0x499   :  { %v772_v35 = vadd.f32 %v771_v26, %v770_v62  ;;  %v706_v6 = vpop.f32.mrb[11].mxu1  ;;  %v757_v8 = vmul.f32 %v1027_v2, %v1322_v48  ;;  %v777_v18 = vsel %vm37_vm0, %v756_v27, 0.0 }
 0x49a   :  { %v773_v7 = vsel %vm37_vm0, %v754_v41, 0.0  ;;  %v755_v36 = vmul.f32 %v706_v6, %v1308_v38 }
 0x49b   :  { %v774_v31 = vadd.f32 %v773_v7, %v772_v35  ;;  %v779_v20 = vsel %vm37_vm0, %v757_v8, 0.0 }
 0x49c   :  { %v775_v10 = vsel %vm37_vm0, %v755_v36, 0.0 }
 0x49d   :  { %v776_v11 = vadd.f32 %v775_v10, %v774_v31 }
 0x49e   :  { %v1030_v61 = vpop.f32.mrb[12].mxu1 }
 0x49f   :  { %v778_v19 = vadd.f32 %v777_v18, %v776_v11  ;;  %v719_v37 = vpop.f32.mrb[13].mxu1  ;;  %v760_v38 = vmul.f32 %v1030_v61, %v1343_v57 }
 0x4a0   :  { %v758_v9 = vmul.f32 %v719_v37, %v1328_v49  ;;  %v1031_v47 = vpop.f32.mrb[14].mxu1 }
 0x4a1   :  { %v722_v12 = vpop.f32.mrb[15].mxu1  ;;  %v780_v15 = vadd.f32 %v779_v20, %v778_v19  ;;  %v761_v0 = vmul.f32 %v1031_v47, %v1348_v58  ;;  %v784_v25 = vsel %vm37_vm0, %v760_v38, 0.0 }
 0x4a2   :  { %v759_v16 = vmul.f32 %v722_v12, %v1333_v50  ;;  %v781_v48 = vsel %vm37_vm0, %v758_v9, 0.0 }
 0x4a3   :  { %1044 = vmatprep.mubr.msk.f32.mxu0 %vm37_vm0, %v780_v15  ;;  %v786_v28 = vsel %vm37_vm0, %v761_v0, 0.0 }
 0x4a4   :  { %v782_v29 = vsel %vm37_vm0, %v759_v16, 0.0 }
 0x4a5   :  { %v783_v54 = vadd.f32 %v782_v29, %v781_v48 }
 0x4a6   :  { %v1034_v30 = vpop.f32.mrb[16].mxu1 }
 0x4a7   :  { %v785_v49 = vadd.f32 %v784_v25, %v783_v54  ;;  %v735_v13 = vpop.f32.mrb[17].mxu1  ;;  %v764_v23 = vmul.f32 %v1034_v30, %v1369_v3  ;;  %v928_v3 = vld [vmem:[%s1671_s5] ss:$0 sm:$0xff] }
 0x4a8   :  { %v762_v57 = vmul.f32 %v735_v13, %v1354_v59  ;;  %v1035_v21 = vpop.f32.mrb[18].mxu1 }
 0x4a9   :  { %v787_v50 = vadd.f32 %v786_v28, %v785_v49  ;;  %v738_v22 = vpop.f32.mrb[19].mxu1  ;;  %v765_v40 = vmul.f32 %v1035_v21, %v1374_v4  ;;  %v792_v55 = vsel %vm37_vm0, %v764_v23, 0.0 }
 0x4aa   :  { %v788_v34 = vsel %vm37_vm0, %v762_v57, 0.0  ;;  %v763_v58 = vmul.f32 %v738_v22, %v1359_v60 }
 0x4ab   :  { %v789_v14 = vadd.f32 %v788_v34, %v787_v50  ;;  %v794_v59 = vsel %vm37_vm0, %v765_v40, 0.0 }
 0x4ac   :  { %v790_v1 = vsel %vm37_vm0, %v763_v58, 0.0 }
 0x4ad   :  { %v791_v45 = vadd.f32 %v790_v1, %v789_v14 }
 0x4af   :  { %v793_v5 = vadd.f32 %v792_v55, %v791_v45 }
 0x4b1   :  { %v795_v32 = vadd.f32 %v794_v59, %v793_v5 }
 0x4b3   :  { %1045 = vmatmul.mubr.msk.f32.vlgmr.msra.gmra.mrb[2].mxu0 %vm37_vm0, %v795_v32 }
 0x586   :  { %v1046_v60 = vpop.f32.mrb[2].mxu0 }
 0x587   :  { %v885_v39 = vadd.f32 %v1046_v60, %v928_v3  ;;  %v879_v4 = vpop.f32.mrb[3].mxu0 }
 0x588   :  { %v880_v17 = vadd.f32 %v928_v3, %v879_v4 }
 0x589   :  { %889 = vst.msk [vmem:[#allocation2 + $0x8] sm:$0xff] %vm37_vm0, %v885_v39 }
 0x58a   :  { %888 = vst.msk [vmem:[#allocation2] sm:$0xff] %vm37_vm0, %v880_v17 }
 0x58b   :  { %1151 = shalt.err (!%p1148_p4)
}
 0x58c   :  { %s1152_s28 = scalar_lea.hbm %s1674_s8, 256 }
 0x58d   :  { %p1153_p5 = scmp.ne.s32.totalorder %s1674_s8, %s1152_s28  ;;  %p1156_p6 = scmp.lt.u32.totalorder %s1152_s28, %s1674_s8 }
 0x58f   :  { %p1158_p7 = pnand %p1156_p6, %p1153_p5 }
 0x591   :  { %1161 = shalt.err (!%p1158_p7)
}
 0x592   :  { %s1166_s9 = smov 128   ;;  %s1167_s10 = smov 8  }
 0x593   :  { %901 = dma.vmem_to_hbm [thread:$0]  %s896_s2, 256, %s1674_s8, [#allocation3], %s1166_s9, %s1166_s9, %s1167_s10  }
 0x594   :  { %1162 = dma.done.wait [#allocation3], 256  }
 0x595   :  { %1163 = vsyncadd [#allocation3], 4294967040 }
 0x596   :  { %905 = vsyncpa [#allocation3], 1 }

</bundles_post_ra>
